<compile_context>
chip_gen: v7x
topology: tpu7x:2x2x1
jax: 0.10.0
libtpu: 0.0.40
codegen_flags: <defaults>
</compile_context>

<pallas_src>
import math

import jax
import jax.numpy as jnp
from jax import lax
from jax.experimental import pallas as pl
from jax.experimental.pallas import tpu as pltpu


# ----------------------------- config -----------------------------
B = 2              # batch
N = 8              # sequence length
D = 32             # embed_dim
H = 4              # heads for the spectral filter
HEAD_DIM = D // H
K = N // 2 + 1     # true rfft frequency bins (=5)
KP = 8             # per-batch frequency bins padded to the 8-row sublane tile
BKP = B * KP       # stacked (padded) frequency rows per real/imag half (=16)
BN = B * N         # folded token rows (=16)
MLP_RATIO = 4.0
DH = int(D * MLP_RATIO)   # 128
LN_EPS = 1e-5
MOD_EPS = 1e-6     # modReLU denominator epsilon

# row offsets inside the packed parameter slabs
_PF_WFILT = 0            # (2*BKP, D) spectral filter (both halves)
_PF_BFILT = 2 * BKP      # (2*BKP, D) spectral bias   (real half only)
_PF_LNB = 4 * BKP        # (8, D): ga, ba, gn, bn, b2, pad, pad, pad
_PW_W1 = 0               # (D, DH)   mlp linear1 weight
_PW_W2T = D              # (D, DH)   mlp linear2 weight, stored transposed
_PW_B1 = 2 * D           # (1, DH)   mlp linear1 bias


def _gelu_erf(v):
    """erf-exact GELU (PyTorch nn.GELU default); erf via Abramowitz-Stegun 7.1.26.

    exp runs on the EUP (free bundle slot); polynomial is a handful of VPU ops.
    |erf error| < 1.5e-7, i.e. f32-exact for practical purposes.
    """
    z = jnp.abs(v) * 0.7071067811865476          # |v| / sqrt(2)
    t = 1.0 / (1.0 + 0.3275911 * z)
    poly = t * (0.254829592 + t * (-0.284496736 + t * (1.421413741
                + t * (-1.453152027 + t * 1.061405429))))
    erf_abs = 1.0 - poly * jnp.exp(-z * z)
    erf_v = jnp.where(v >= 0.0, erf_abs, -erf_abs)
    return 0.5 * v * (1.0 + erf_v)


def _layer_norm(v, gamma, beta):
    # Single pass: sum and sum-of-squares are independent reductions, so the
    # two XLU reduces can overlap (previously var depended on mean).
    inv_d = 1.0 / v.shape[-1]
    s1 = jnp.sum(v, axis=-1, keepdims=True)
    s2 = jnp.sum(v * v, axis=-1, keepdims=True)
    mu = s1 * inv_d
    var = jnp.maximum(s2 * inv_d - mu * mu, 0.0)
    return (v - mu) * lax.rsqrt(var + LN_EPS) * gamma + beta


def _fft_block_kernel(x_ref, dft_ref, pf_ref, pw_ref, out_ref):
    # x_ref  : (BN, D)         f32   tokens, batch folded into rows
    # dft_ref: (4*BKP, BN)     f32   rows [0:2BKP] stacked rfft (real;imag),
    #                                [2BKP:3BKP] irfft real, [3BKP:4BKP] irfft imag
    # pf_ref : (4*BKP + 8, D)  f32   rows [wfilt | bfilt | ga ba gn bn b2 pad]
    # pw_ref : (2*D + 16, DH)  bf16  rows [w1 | w2^T | b1 pad]
    # out_ref: (BN, D)         f32
    x = x_ref[...]

    ga = pf_ref[_PF_LNB + 0:_PF_LNB + 1, :]
    ba = pf_ref[_PF_LNB + 1:_PF_LNB + 2, :]
    gn = pf_ref[_PF_LNB + 2:_PF_LNB + 3, :]
    bn = pf_ref[_PF_LNB + 3:_PF_LNB + 4, :]
    b2 = pf_ref[_PF_LNB + 4:_PF_LNB + 5, :]

    # ---- MultiHeadSpectralAttention: pre-LayerNorm ----
    xn = _layer_norm(x, ga, ba)

    # ---- rfft over all batches: one block-diagonal ortho-DFT matmul (f32) ----
    f = jnp.dot(dft_ref[0:2 * BKP, :], xn,
                preferred_element_type=jnp.float32)              # (2BKP, D)

    # ---- per-head frequency filter + bias (bias on the real half only) ----
    f = (f * pf_ref[_PF_WFILT:_PF_WFILT + 2 * BKP, :]
         + pf_ref[_PF_BFILT:_PF_BFILT + 2 * BKP, :])

    # ---- modReLU-like activation: z * gelu(|z|) / (|z| + eps) ----
    fr = f[0:BKP, :]                                             # aligned row views
    fi = f[BKP:2 * BKP, :]
    mag = jnp.sqrt(fr * fr + fi * fi + 1e-12)
    scale = _gelu_erf(mag) / (mag + MOD_EPS)

    # ---- irfft: two accumulating block-diagonal dots (no re-assembly) ----
    xf = jnp.dot(dft_ref[2 * BKP:3 * BKP, :], fr * scale,
                 preferred_element_type=jnp.float32)
    xf = xf + jnp.dot(dft_ref[3 * BKP:4 * BKP, :], fi * scale,
                      preferred_element_type=jnp.float32)        # (BN, D)

    # Attention module carries its own internal residual (FFTNet
    # MultiHeadSpectralAttention returns x + spectral(norm(x))); the encoder
    # block then adds x again: h = x + drop_path(attention(x)), drop_path=Id.
    attn_out = x + xf
    h = x + attn_out

    # ---- block LayerNorm + MLP (Linear -> GELU -> Linear) ----
    hn = _layer_norm(h, gn, bn)
    b1 = pw_ref[_PW_B1:_PW_B1 + 1, :].astype(jnp.float32)
    m = jnp.dot(hn.astype(jnp.bfloat16), pw_ref[_PW_W1:_PW_W1 + D, :],
                preferred_element_type=jnp.float32) + b1
    m = _gelu_erf(m)
    # m @ w2, with w2 stored transposed in the bf16 slab (q@k.T-style NT matmul).
    m = lax.dot_general(m.astype(jnp.bfloat16), pw_ref[_PW_W2T:_PW_W2T + D, :],
                        dimension_numbers=(((1,), (1,)), ((), ())),
                        preferred_element_type=jnp.float32)      # (BN, D)

    out_ref[...] = h + m + b2                                    # x + drop_path(mlp(norm(x)))


def fft_transformer_encoder_block(x, params):
    """x: (B, N, D) float32. params: dict from build_params()."""
    Bx, Nx, Dx = x.shape
    assert (Bx, Nx, Dx) == (B, N, D)
    x2 = x.reshape(Bx * Nx, Dx)                  # fold batch into token rows

    vmem = lambda: pl.BlockSpec(memory_space=pltpu.MemorySpace.VMEM)
    cost = pl.CostEstimate(flops=370_000, transcendentals=8_192, bytes_accessed=40_000)

    out2 = pl.pallas_call(
        _fft_block_kernel,
        out_shape=jax.ShapeDtypeStruct((Bx * Nx, Dx), jnp.float32),
        in_specs=[vmem(), vmem(), vmem(), vmem()],
        out_specs=vmem(),
        cost_estimate=cost,
        # grid=() : single invocation; total footprint << 64 KiB on every gen.
        # TODO(synk): for large batch, add a leading "parallel" grid axis over
        #   >=256-row chunks so v7x's two TensorCores split the work, and for
        #   repeated per-layer use keep the parameter slabs resident in VMEM
        #   across calls (cross-call prefetch) instead of re-DMA-ing them.
    )(x2, params["dft"], params["pf32"], params["pbf16"])
    return out2.reshape(Bx, Nx, Dx)


def build_params(key):
    f32 = jnp.float32

    # --- per-batch ortho rfft/irfft matrices, frequency axis padded K(5)->KP(8) ---
    n = jnp.arange(N, dtype=f32)
    k = jnp.arange(K, dtype=f32)
    theta = 2.0 * math.pi * k[:, None] * n[None, :] / N          # (K, N)
    inv_sqrt_n = 1.0 / math.sqrt(N)
    cr = jnp.cos(theta) * inv_sqrt_n                             # rfft real   (K, N)
    ci = -jnp.sin(theta) * inv_sqrt_n                            # rfft imag   (K, N)
    wk = jnp.where((k == 0) | (k == N // 2), 1.0, 2.0)           # hermitian weights
    ir = (jnp.cos(theta).T * wk[None, :]) * inv_sqrt_n           # irfft real  (N, K)
    ii = (-jnp.sin(theta).T * wk[None, :]) * inv_sqrt_n          # irfft imag  (N, K)

    pad = KP - K
    cr = jnp.pad(cr, ((0, pad), (0, 0)))                         # zero freq rows
    ci = jnp.pad(ci, ((0, pad), (0, 0)))
    ir = jnp.pad(ir, ((0, 0), (0, pad)))                         # zero freq cols
    ii = jnp.pad(ii, ((0, 0), (0, pad)))

    # block-diagonal across batch -> one f32 DFT slab (f32 keeps the rfft->irfft
    # round trip accurate; bf16 here was a flagged accuracy concern).
    eye_b = jnp.eye(B, dtype=f32)
    cbd = jnp.concatenate([jnp.kron(eye_b, cr), jnp.kron(eye_b, ci)], axis=0)  # (2BKP, BN)
    irbd_r = jnp.kron(eye_b, ir)                                 # (BN, BKP)
    irbd_i = jnp.kron(eye_b, ii)                                 # (BN, BKP)
    dft = jnp.concatenate([cbd, irbd_r, irbd_i], axis=0)         # (4*BKP, BN)

    # --- spectral filter / bias (base_filter = 1, base_bias = -0.1 per head) ---
    base_filter = jnp.ones((H, K), f32)
    base_bias = jnp.full((H, K), -0.1, f32)
    wf = jnp.pad(jnp.repeat(base_filter.T, HEAD_DIM, axis=1), ((0, pad), (0, 0)))  # (KP, D)
    bf = jnp.pad(jnp.repeat(base_bias.T, HEAD_DIM, axis=1), ((0, pad), (0, 0)))    # (KP, D)
    wfilt = jnp.tile(wf, (2 * B, 1))                             # (2BKP, D): both halves
    bfilt = jnp.concatenate([jnp.tile(bf, (B, 1)),
                             jnp.zeros((BKP, D), f32)], axis=0)  # bias on real half only
    # TODO(synk): FFTNet's adaptive filter modulation MLP is not modeled; the
    #   constant base filter/bias above matches the previous kernel's choice.

    # --- MLP weights (deterministic demo init) ---
    k1, k2, k3, k4 = jax.random.split(key, 4)
    w1 = jax.random.normal(k1, (D, DH), f32) * (1.0 / math.sqrt(D))
    b1 = jax.random.normal(k2, (DH,), f32) * 0.02
    w2 = jax.random.normal(k3, (DH, D), f32) * (1.0 / math.sqrt(DH))
    b2 = jax.random.normal(k4, (D,), f32) * 0.02

    # --- pack LayerNorm vectors + mlp bias2 (rows: ga, ba, gn, bn, b2, pad x3) ---
    lnb = jnp.stack([
        jnp.ones((D,), f32), jnp.zeros((D,), f32),   # attention pre-norm gamma/beta
        jnp.ones((D,), f32), jnp.zeros((D,), f32),   # block LayerNorm gamma/beta
        b2,
        jnp.zeros((D,), f32), jnp.zeros((D,), f32), jnp.zeros((D,), f32),
    ], axis=0)                                       # (8, D)

    pf32 = jnp.concatenate([wfilt, bfilt, lnb], axis=0)          # (4*BKP + 8, D) f32

    # --- bf16 MXU slab: w1 | w2^T | b1 (row count padded to the 16-row bf16 tile) ---
    pbf16 = jnp.concatenate(
        [w1, w2.T, b1[None, :], jnp.zeros((15, DH), f32)], axis=0
    ).astype(jnp.bfloat16)                                       # (2*D + 16, DH)

    return dict(dft=dft, pf32=pf32, pbf16=pbf16)


if __name__ == "__main__":
    key = jax.random.PRNGKey(0)
    kx, kp = jax.random.split(key)
    x = jax.random.normal(kx, (B, N, D), jnp.float32)
    params = build_params(kp)

    out = jax.block_until_ready(fft_transformer_encoder_block(x, params))
    assert out.shape == (B, N, D) and out.dtype == jnp.float32
    assert bool(jnp.all(jnp.isfinite(out)))
    print("KERNEL_OK")
</pallas_src>

<mosaic_0001>
module attributes {stable_mosaic.version = 11 : i64} {
  func.func @_fft_block_kernel(%arg0: memref<16x32xf32, #tpu.memory_space<vmem>>, %arg1: memref<64x16xf32, #tpu.memory_space<vmem>>, %arg2: memref<72x32xf32, #tpu.memory_space<vmem>>, %arg3: memref<80x128xbf16, #tpu.memory_space<vmem>>, %arg4: memref<16x32xf32, #tpu.memory_space<vmem>>) attributes {dimension_semantics = [], scalar_prefetch = 0 : i64, scratch_operands = 0 : i64, tpu.core_type = #tpu.core_type<tc>} {
    %c0 = arith.constant 0 : index
    %c0_0 = arith.constant 0 : index
    %0 = vector.load %arg0[%c0, %c0_0] : memref<16x32xf32, #tpu.memory_space<vmem>>, vector<16x32xf32>
    %c64 = arith.constant 64 : index
    %c0_1 = arith.constant 0 : index
    %1 = vector.load %arg2[%c64, %c0_1] : memref<72x32xf32, #tpu.memory_space<vmem>>, vector<1x32xf32>
    %c65 = arith.constant 65 : index
    %c0_2 = arith.constant 0 : index
    %2 = vector.load %arg2[%c65, %c0_2] : memref<72x32xf32, #tpu.memory_space<vmem>>, vector<1x32xf32>
    %c66 = arith.constant 66 : index
    %c0_3 = arith.constant 0 : index
    %3 = vector.load %arg2[%c66, %c0_3] : memref<72x32xf32, #tpu.memory_space<vmem>>, vector<1x32xf32>
    %c67 = arith.constant 67 : index
    %c0_4 = arith.constant 0 : index
    %4 = vector.load %arg2[%c67, %c0_4] : memref<72x32xf32, #tpu.memory_space<vmem>>, vector<1x32xf32>
    %c68 = arith.constant 68 : index
    %c0_5 = arith.constant 0 : index
    %5 = vector.load %arg2[%c68, %c0_5] : memref<72x32xf32, #tpu.memory_space<vmem>>, vector<1x32xf32>
    %cst = arith.constant dense<0.000000e+00> : vector<16xf32>
    %6 = vector.multi_reduction <add>, %0, %cst [1] : vector<16x32xf32> to vector<16xf32>
    %7 = vector.shape_cast %6 : vector<16xf32> to vector<16x1xf32>
    %8 = arith.mulf %0, %0 : vector<16x32xf32>
    %cst_6 = arith.constant dense<0.000000e+00> : vector<16xf32>
    %9 = vector.multi_reduction <add>, %8, %cst_6 [1] : vector<16x32xf32> to vector<16xf32>
    %10 = vector.shape_cast %9 : vector<16xf32> to vector<16x1xf32>
    %cst_7 = arith.constant 3.125000e-02 : f32
    %11 = vector.broadcast %cst_7 : f32 to vector<16x1xf32>
    %12 = arith.mulf %7, %11 : vector<16x1xf32>
    %cst_8 = arith.constant 3.125000e-02 : f32
    %13 = vector.broadcast %cst_8 : f32 to vector<16x1xf32>
    %14 = arith.mulf %10, %13 : vector<16x1xf32>
    %15 = arith.mulf %12, %12 : vector<16x1xf32>
    %16 = arith.subf %14, %15 : vector<16x1xf32>
    %cst_9 = arith.constant 0.000000e+00 : f32
    %17 = vector.broadcast %cst_9 : f32 to vector<16x1xf32>
    %18 = arith.maximumf %16, %17 : vector<16x1xf32>
    %19 = vector.broadcast %12 : vector<16x1xf32> to vector<16x32xf32>
    %20 = arith.subf %0, %19 : vector<16x32xf32>
    %cst_10 = arith.constant 9.99999974E-6 : f32
    %21 = vector.broadcast %cst_10 : f32 to vector<16x1xf32>
    %22 = arith.addf %18, %21 : vector<16x1xf32>
    %23 = math.rsqrt %22 : vector<16x1xf32>
    %24 = vector.broadcast %23 : vector<16x1xf32> to vector<16x32xf32>
    %25 = arith.mulf %20, %24 : vector<16x32xf32>
    %26 = vector.broadcast %1 : vector<1x32xf32> to vector<16x32xf32>
    %27 = arith.mulf %25, %26 : vector<16x32xf32>
    %28 = vector.broadcast %2 : vector<1x32xf32> to vector<16x32xf32>
    %29 = arith.addf %27, %28 : vector<16x32xf32>
    %c0_11 = arith.constant 0 : index
    %c0_12 = arith.constant 0 : index
    %30 = vector.load %arg1[%c0_11, %c0_12] : memref<64x16xf32, #tpu.memory_space<vmem>>, vector<32x16xf32>
    %cst_13 = arith.constant dense<0.000000e+00> : vector<32x32xf32>
    %31 = tpu.matmul %30, %29, %cst_13 {dimension_numbers = #tpu.dot_dimension_numbers<[1], [0], [0], [1], [0, 0, 1, 1], [], []>} : vector<32x16xf32>, vector<16x32xf32>, vector<32x32xf32> -> vector<32x32xf32>
    %c0_14 = arith.constant 0 : index
    %c0_15 = arith.constant 0 : index
    %32 = vector.load %arg2[%c0_14, %c0_15] : memref<72x32xf32, #tpu.memory_space<vmem>>, vector<32x32xf32>
    %33 = arith.mulf %31, %32 : vector<32x32xf32>
    %c32 = arith.constant 32 : index
    %c0_16 = arith.constant 0 : index
    %34 = vector.load %arg2[%c32, %c0_16] : memref<72x32xf32, #tpu.memory_space<vmem>>, vector<32x32xf32>
    %35 = arith.addf %33, %34 : vector<32x32xf32>
    %36 = vector.extract_strided_slice %35 {offsets = [0, 0], sizes = [16, 32], strides = [1, 1]} : vector<32x32xf32> to vector<16x32xf32>
    %37 = vector.extract_strided_slice %35 {offsets = [16, 0], sizes = [16, 32], strides = [1, 1]} : vector<32x32xf32> to vector<16x32xf32>
    %38 = arith.mulf %36, %36 : vector<16x32xf32>
    %39 = arith.mulf %37, %37 : vector<16x32xf32>
    %40 = arith.addf %38, %39 : vector<16x32xf32>
    %cst_17 = arith.constant 9.99999996E-13 : f32
    %41 = vector.broadcast %cst_17 : f32 to vector<16x32xf32>
    %42 = arith.addf %40, %41 : vector<16x32xf32>
    %43 = math.sqrt %42 : vector<16x32xf32>
    %44 = math.absf %43 : vector<16x32xf32>
    %cst_18 = arith.constant 0.707106769 : f32
    %45 = vector.broadcast %cst_18 : f32 to vector<16x32xf32>
    %46 = arith.mulf %44, %45 : vector<16x32xf32>
    %cst_19 = arith.constant 0.327591091 : f32
    %47 = vector.broadcast %cst_19 : f32 to vector<16x32xf32>
    %48 = arith.mulf %47, %46 : vector<16x32xf32>
    %cst_20 = arith.constant 1.000000e+00 : f32
    %49 = vector.broadcast %cst_20 : f32 to vector<16x32xf32>
    %50 = arith.addf %49, %48 : vector<16x32xf32>
    %cst_21 = arith.constant 1.000000e+00 : f32
    %51 = vector.broadcast %cst_21 : f32 to vector<16x32xf32>
    %52 = arith.divf %51, %50 : vector<16x32xf32>
    %cst_22 = arith.constant 1.06140542 : f32
    %53 = vector.broadcast %cst_22 : f32 to vector<16x32xf32>
    %54 = arith.mulf %52, %53 : vector<16x32xf32>
    %cst_23 = arith.constant -1.45315206 : f32
    %55 = vector.broadcast %cst_23 : f32 to vector<16x32xf32>
    %56 = arith.addf %55, %54 : vector<16x32xf32>
    %57 = arith.mulf %52, %56 : vector<16x32xf32>
    %cst_24 = arith.constant 1.42141378 : f32
    %58 = vector.broadcast %cst_24 : f32 to vector<16x32xf32>
    %59 = arith.addf %58, %57 : vector<16x32xf32>
    %60 = arith.mulf %52, %59 : vector<16x32xf32>
    %cst_25 = arith.constant -0.284496725 : f32
    %61 = vector.broadcast %cst_25 : f32 to vector<16x32xf32>
    %62 = arith.addf %61, %60 : vector<16x32xf32>
    %63 = arith.mulf %52, %62 : vector<16x32xf32>
    %cst_26 = arith.constant 0.254829586 : f32
    %64 = vector.broadcast %cst_26 : f32 to vector<16x32xf32>
    %65 = arith.addf %64, %63 : vector<16x32xf32>
    %66 = arith.mulf %52, %65 : vector<16x32xf32>
    %cst_27 = arith.constant 0.000000e+00 : f32
    %67 = vector.broadcast %cst_27 : f32 to vector<16x32xf32>
    %68 = arith.subf %67, %46 : vector<16x32xf32>
    %69 = arith.mulf %68, %46 : vector<16x32xf32>
    %70 = math.exp %69 : vector<16x32xf32>
    %71 = arith.mulf %66, %70 : vector<16x32xf32>
    %cst_28 = arith.constant 1.000000e+00 : f32
    %72 = vector.broadcast %cst_28 : f32 to vector<16x32xf32>
    %73 = arith.subf %72, %71 : vector<16x32xf32>
    %cst_29 = arith.constant 0.000000e+00 : f32
    %74 = vector.broadcast %cst_29 : f32 to vector<16x32xf32>
    %75 = arith.cmpf oge, %43, %74 : vector<16x32xf32>
    %cst_30 = arith.constant 0.000000e+00 : f32
    %76 = vector.broadcast %cst_30 : f32 to vector<16x32xf32>
    %77 = arith.subf %76, %73 : vector<16x32xf32>
    %78 = arith.select %75, %73, %77 : vector<16x32xi1>, vector<16x32xf32>
    %cst_31 = arith.constant 5.000000e-01 : f32
    %79 = vector.broadcast %cst_31 : f32 to vector<16x32xf32>
    %80 = arith.mulf %79, %43 : vector<16x32xf32>
    %cst_32 = arith.constant 1.000000e+00 : f32
    %81 = vector.broadcast %cst_32 : f32 to vector<16x32xf32>
    %82 = arith.addf %81, %78 : vector<16x32xf32>
    %83 = arith.mulf %80, %82 : vector<16x32xf32>
    %cst_33 = arith.constant 9.99999997E-7 : f32
    %84 = vector.broadcast %cst_33 : f32 to vector<16x32xf32>
    %85 = arith.addf %43, %84 : vector<16x32xf32>
    %86 = arith.divf %83, %85 : vector<16x32xf32>
    %c32_34 = arith.constant 32 : index
    %c0_35 = arith.constant 0 : index
    %87 = vector.load %arg1[%c32_34, %c0_35] : memref<64x16xf32, #tpu.memory_space<vmem>>, vector<16x16xf32>
    %88 = arith.mulf %36, %86 : vector<16x32xf32>
    %cst_36 = arith.constant dense<0.000000e+00> : vector<16x32xf32>
    %89 = tpu.matmul %87, %88, %cst_36 {dimension_numbers = #tpu.dot_dimension_numbers<[1], [0], [0], [1], [0, 0, 1, 1], [], []>} : vector<16x16xf32>, vector<16x32xf32>, vector<16x32xf32> -> vector<16x32xf32>
    %c48 = arith.constant 48 : index
    %c0_37 = arith.constant 0 : index
    %90 = vector.load %arg1[%c48, %c0_37] : memref<64x16xf32, #tpu.memory_space<vmem>>, vector<16x16xf32>
    %91 = arith.mulf %37, %86 : vector<16x32xf32>
    %cst_38 = arith.constant dense<0.000000e+00> : vector<16x32xf32>
    %92 = tpu.matmul %90, %91, %cst_38 {dimension_numbers = #tpu.dot_dimension_numbers<[1], [0], [0], [1], [0, 0, 1, 1], [], []>} : vector<16x16xf32>, vector<16x32xf32>, vector<16x32xf32> -> vector<16x32xf32>
    %93 = arith.addf %89, %92 : vector<16x32xf32>
    %94 = arith.addf %0, %93 : vector<16x32xf32>
    %95 = arith.addf %0, %94 : vector<16x32xf32>
    %cst_39 = arith.constant dense<0.000000e+00> : vector<16xf32>
    %96 = vector.multi_reduction <add>, %95, %cst_39 [1] : vector<16x32xf32> to vector<16xf32>
    %97 = vector.shape_cast %96 : vector<16xf32> to vector<16x1xf32>
    %98 = arith.mulf %95, %95 : vector<16x32xf32>
    %cst_40 = arith.constant dense<0.000000e+00> : vector<16xf32>
    %99 = vector.multi_reduction <add>, %98, %cst_40 [1] : vector<16x32xf32> to vector<16xf32>
    %100 = vector.shape_cast %99 : vector<16xf32> to vector<16x1xf32>
    %cst_41 = arith.constant 3.125000e-02 : f32
    %101 = vector.broadcast %cst_41 : f32 to vector<16x1xf32>
    %102 = arith.mulf %97, %101 : vector<16x1xf32>
    %cst_42 = arith.constant 3.125000e-02 : f32
    %103 = vector.broadcast %cst_42 : f32 to vector<16x1xf32>
    %104 = arith.mulf %100, %103 : vector<16x1xf32>
    %105 = arith.mulf %102, %102 : vector<16x1xf32>
    %106 = arith.subf %104, %105 : vector<16x1xf32>
    %cst_43 = arith.constant 0.000000e+00 : f32
    %107 = vector.broadcast %cst_43 : f32 to vector<16x1xf32>
    %108 = arith.maximumf %106, %107 : vector<16x1xf32>
    %109 = vector.broadcast %102 : vector<16x1xf32> to vector<16x32xf32>
    %110 = arith.subf %95, %109 : vector<16x32xf32>
    %cst_44 = arith.constant 9.99999974E-6 : f32
    %111 = vector.broadcast %cst_44 : f32 to vector<16x1xf32>
    %112 = arith.addf %108, %111 : vector<16x1xf32>
    %113 = math.rsqrt %112 : vector<16x1xf32>
    %114 = vector.broadcast %113 : vector<16x1xf32> to vector<16x32xf32>
    %115 = arith.mulf %110, %114 : vector<16x32xf32>
    %116 = vector.broadcast %3 : vector<1x32xf32> to vector<16x32xf32>
    %117 = arith.mulf %115, %116 : vector<16x32xf32>
    %118 = vector.broadcast %4 : vector<1x32xf32> to vector<16x32xf32>
    %119 = arith.addf %117, %118 : vector<16x32xf32>
    %c64_45 = arith.constant 64 : index
    %c0_46 = arith.constant 0 : index
    %120 = vector.load %arg3[%c64_45, %c0_46] : memref<80x128xbf16, #tpu.memory_space<vmem>>, vector<1x128xbf16>
    %121 = arith.extf %120 : vector<1x128xbf16> to vector<1x128xf32>
    %122 = arith.truncf %119 : vector<16x32xf32> to vector<16x32xbf16>
    %c0_47 = arith.constant 0 : index
    %c0_48 = arith.constant 0 : index
    %123 = vector.load %arg3[%c0_47, %c0_48] : memref<80x128xbf16, #tpu.memory_space<vmem>>, vector<32x128xbf16>
    %cst_49 = arith.constant dense<0.000000e+00> : vector<16x128xf32>
    %124 = tpu.matmul %122, %123, %cst_49 {dimension_numbers = #tpu.dot_dimension_numbers<[1], [0], [0], [1], [0, 0, 1, 1], [], []>} : vector<16x32xbf16>, vector<32x128xbf16>, vector<16x128xf32> -> vector<16x128xf32>
    %125 = vector.broadcast %121 : vector<1x128xf32> to vector<16x128xf32>
    %126 = arith.addf %124, %125 : vector<16x128xf32>
    %127 = math.absf %126 : vector<16x128xf32>
    %cst_50 = arith.constant 0.707106769 : f32
    %128 = vector.broadcast %cst_50 : f32 to vector<16x128xf32>
    %129 = arith.mulf %127, %128 : vector<16x128xf32>
    %cst_51 = arith.constant 0.327591091 : f32
    %130 = vector.broadcast %cst_51 : f32 to vector<16x128xf32>
    %131 = arith.mulf %130, %129 : vector<16x128xf32>
    %cst_52 = arith.constant 1.000000e+00 : f32
    %132 = vector.broadcast %cst_52 : f32 to vector<16x128xf32>
    %133 = arith.addf %132, %131 : vector<16x128xf32>
    %cst_53 = arith.constant 1.000000e+00 : f32
    %134 = vector.broadcast %cst_53 : f32 to vector<16x128xf32>
    %135 = arith.divf %134, %133 : vector<16x128xf32>
    %cst_54 = arith.constant 1.06140542 : f32
    %136 = vector.broadcast %cst_54 : f32 to vector<16x128xf32>
    %137 = arith.mulf %135, %136 : vector<16x128xf32>
    %cst_55 = arith.constant -1.45315206 : f32
    %138 = vector.broadcast %cst_55 : f32 to vector<16x128xf32>
    %139 = arith.addf %138, %137 : vector<16x128xf32>
    %140 = arith.mulf %135, %139 : vector<16x128xf32>
    %cst_56 = arith.constant 1.42141378 : f32
    %141 = vector.broadcast %cst_56 : f32 to vector<16x128xf32>
    %142 = arith.addf %141, %140 : vector<16x128xf32>
    %143 = arith.mulf %135, %142 : vector<16x128xf32>
    %cst_57 = arith.constant -0.284496725 : f32
    %144 = vector.broadcast %cst_57 : f32 to vector<16x128xf32>
    %145 = arith.addf %144, %143 : vector<16x128xf32>
    %146 = arith.mulf %135, %145 : vector<16x128xf32>
    %cst_58 = arith.constant 0.254829586 : f32
    %147 = vector.broadcast %cst_58 : f32 to vector<16x128xf32>
    %148 = arith.addf %147, %146 : vector<16x128xf32>
    %149 = arith.mulf %135, %148 : vector<16x128xf32>
    %cst_59 = arith.constant 0.000000e+00 : f32
    %150 = vector.broadcast %cst_59 : f32 to vector<16x128xf32>
    %151 = arith.subf %150, %129 : vector<16x128xf32>
    %152 = arith.mulf %151, %129 : vector<16x128xf32>
    %153 = math.exp %152 : vector<16x128xf32>
    %154 = arith.mulf %149, %153 : vector<16x128xf32>
    %cst_60 = arith.constant 1.000000e+00 : f32
    %155 = vector.broadcast %cst_60 : f32 to vector<16x128xf32>
    %156 = arith.subf %155, %154 : vector<16x128xf32>
    %cst_61 = arith.constant 0.000000e+00 : f32
    %157 = vector.broadcast %cst_61 : f32 to vector<16x128xf32>
    %158 = arith.cmpf oge, %126, %157 : vector<16x128xf32>
    %cst_62 = arith.constant 0.000000e+00 : f32
    %159 = vector.broadcast %cst_62 : f32 to vector<16x128xf32>
    %160 = arith.subf %159, %156 : vector<16x128xf32>
    %161 = arith.select %158, %156, %160 : vector<16x128xi1>, vector<16x128xf32>
    %cst_63 = arith.constant 5.000000e-01 : f32
    %162 = vector.broadcast %cst_63 : f32 to vector<16x128xf32>
    %163 = arith.mulf %162, %126 : vector<16x128xf32>
    %cst_64 = arith.constant 1.000000e+00 : f32
    %164 = vector.broadcast %cst_64 : f32 to vector<16x128xf32>
    %165 = arith.addf %164, %161 : vector<16x128xf32>
    %166 = arith.mulf %163, %165 : vector<16x128xf32>
    %167 = arith.truncf %166 : vector<16x128xf32> to vector<16x128xbf16>
    %c32_65 = arith.constant 32 : index
    %c0_66 = arith.constant 0 : index
    %168 = vector.load %arg3[%c32_65, %c0_66] : memref<80x128xbf16, #tpu.memory_space<vmem>>, vector<32x128xbf16>
    %cst_67 = arith.constant dense<0.000000e+00> : vector<16x32xf32>
    %169 = tpu.matmul %167, %168, %cst_67 {dimension_numbers = #tpu.dot_dimension_numbers<[1], [1], [0], [0], [0, 0, 1, 0], [], []>} : vector<16x128xbf16>, vector<32x128xbf16>, vector<16x32xf32> -> vector<16x32xf32>
    %170 = arith.addf %95, %169 : vector<16x32xf32>
    %171 = vector.broadcast %5 : vector<1x32xf32> to vector<16x32xf32>
    %172 = arith.addf %170, %171 : vector<16x32xf32>
    %c0_68 = arith.constant 0 : index
    %c0_69 = arith.constant 0 : index
    %173 = vector.load %arg4[%c0_68, %c0_69] : memref<16x32xf32, #tpu.memory_space<vmem>>, vector<16x32xf32>
    tpu.vector_store %arg4[%c0_68, %c0_69], %172 {strides = array<i32>} : memref<16x32xf32, #tpu.memory_space<vmem>>, vector<16x32xf32>,
    return
  }
}

</mosaic_0001>

<bundles_post_ra>
// kernel: tpu_custom_call.1
= control target key start
LH: loop header
LB: loop body
LE: loop exit
PB: predicated region body
PF: predicated region fallthrough
CT: control target
= control target key end

     0   :  { %vm26_vm0 = vcmask 261120   ;;  %s1046_s0 = inlined_call_operand.vmem [shape: f32[16,32], index: 0, kind: input, shape index: {}]   ;;  %s1047_s1 = inlined_call_operand.vmem [shape: f32[64,16], index: 1, kind: input, shape index: {}]   ;;  %s1048_s2 = inlined_call_operand.vmem [shape: f32[72,32], index: 2, kind: input, shape index: {}]   ;;  %s1049_s3 = inlined_call_operand.vmem [shape: bf16[80,128], index: 3, kind: input, shape index: {}]   ;;  %s1050_s4 = inlined_call_operand.hbm [shape: f32[16,32], index: 4, kind: output, shape index: {}]  }
   0x1   :  { %v884_v0 = vld [vmem:[%s1046_s0] sm:$0xff]  ;;  %v889_v1 = vld [vmem:[%s1046_s0 + $0x8] sm:$0xff] }
   0x2   :  { %v27_v2 = vsel %vm26_vm0, %v884_v0, 0.0  ;;  %v33_v3 = vmul.f32 %v884_v0, %v884_v0  ;;  %v34_v4 = vmul.f32 %v889_v1, %v889_v1  ;;  %v30_v6 = vsel %vm26_vm0, %v889_v1, 0.0 }
   0x3   :  { %28 = vadd.xlane.f32.xlu0 %v27_v2 }
   0x4   :  { %v35_v5 = vsel %vm26_vm0, %v33_v3, 0.0 }
   0x5   :  { %36 = vadd.xlane.f32.xlu1 %v35_v5 }
   0x6   :  { %9 = vsyncpa [#allocation3], 0  ;;  %v38_v7 = vsel %vm26_vm0, %v34_v4, 0.0  ;;  %v71_v8 = vld [vmem:[%s1047_s1] sm:$0xff]  ;;  %vm75_vm1 = vcmask 130048   ;;  %v72_v38 = vld [vmem:[%s1047_s1 + $0x8] sm:$0xff] }
   0x7   :  { %31 = vadd.xlane.f32.xlu0 %v30_v6  ;;  %736 = vmatprep.mubr.msk.f32.mxu0 %vm75_vm1, %v71_v8  ;;  %v694_v28 = vld [vmem:[%s1048_s2 + $0x40] ss:$0 sm:$0xff]  ;;  %v695_v33 = vld [vmem:[%s1048_s2 + $0x41] ss:$0 sm:$0xff]  ;;  %v73_v39 = vld [vmem:[%s1047_s1 + $0x10] sm:$0xff]  ;;  %vm852_vm8 = vmmov 0  }
   0x8   :  { %v74_v40 = vld [vmem:[%s1047_s1 + $0x18] sm:$0xff]  ;;  %v275_v41 = vld [vmem:[%s1047_s1 + $0x30] sm:$0xff]  ;;  %v271_v42 = vld [vmem:[%s1047_s1 + $0x20] sm:$0xff]  ;;  %s853_s15 = smov [#allocation2]  }
   0x9   :  { %39 = vadd.xlane.f32.xlu1 %v38_v7  ;;  %753 = vmatprep.mubr.msk.f32.mxu1 %vm75_vm1, %v271_v42  ;;  %v174_v43 = vld [vmem:[%s1048_s2 + $0x8] sm:$0xff]  ;;  %v173_v44 = vld [vmem:[%s1048_s2] sm:$0xff]  ;;  %v176_v50 = vld [vmem:[%s1048_s2 + $0x18] sm:$0xff]  ;;  %s683_s16 = sshll.u32 %s853_s15, 4  ;;  %s684_s16 = int_to_ptr.vmem [resolvable:$true] %s683_s16 }
   0xa   :  { %v182_v48 = vld [vmem:[%s1048_s2 + $0x28] sm:$0xff]  ;;  %v181_v51 = vld [vmem:[%s1048_s2 + $0x20] sm:$0xff]  ;;  %v175_v52 = vld [vmem:[%s1048_s2 + $0x10] sm:$0xff]  ;;  %s827_s17 = scalar_lea.vmem %s684_s16, 256  ;;  %p832_p1 = scmp.lt.s32.totalorder %s684_s16, %s684_s16 }
   0xb   :  { %v184_v54 = vld [vmem:[%s1048_s2 + $0x38] sm:$0xff]  ;;  %v183_v58 = vld [vmem:[%s1048_s2 + $0x30] sm:$0xff]  ;;  %p828_p0 = scmp.ne.s32.totalorder %s684_s16, %s827_s17  ;;  %p833_p2 = scmp.lt.s32.totalorder %s827_s17, %s827_s17 }
   0xd   :  { %p834_p3 = por %p833_p2, %p832_p1 }
   0xf   :  { %p835_p4 = pnand %p834_p3, %p828_p0 }
  0x90   :  { %v29_v9 = vpop.xlane.xlu0 %28 }
  0x91   :  { %v41_v10 = vmul.f32 0.03125, %v29_v9 }
  0x92   :  { %v37_v11 = vpop.xlane.xlu1 %36 }
  0x93   :  { %v45_v12 = vmul.f32 %v41_v10, %v41_v10  ;;  %v43_v13 = vmul.f32 0.03125, %v37_v11  ;;  %v51_v25 = vsub.f32 %v884_v0, %v41_v10 }
  0x94   :  { %v32_v14 = vpop.xlane.xlu0 %31 }
  0x95   :  { %v47_v15 = vsub.f32 %v43_v13, %v45_v12  ;;  %v42_v16 = vmul.f32 0.03125, %v32_v14 }
  0x96   :  { %v40_v17 = vpop.xlane.xlu1 %39 }
  0x97   :  { %v49_v18 = vmax.f32 %v47_v15, 0.0  ;;  %v46_v19 = vmul.f32 %v42_v16, %v42_v16  ;;  %v44_v20 = vmul.f32 0.03125, %v40_v17  ;;  %v52_v29 = vsub.f32 %v889_v1, %v42_v16 }
  0x99   :  { %v53_v21 = vadd.f32 1e-05, %v49_v18  ;;  %v48_v22 = vsub.f32 %v44_v20, %v46_v19 }
  0x9b   :  { %795 = vrsqrt.f32 %v53_v21  ;;  %v50_v23 = vmax.f32 %v48_v22, 0.0 }
  0x9d   :  { %v54_v24 = vadd.f32 1e-05, %v50_v23 }
  0x9f   :  { %797 = vrsqrt.f32 %v54_v24 }
  0xa5   :  { %v796_v26 = vpop.eup %795 }
  0xa6   :  { %v57_v27 = vmul.f32 %v796_v26, %v51_v25 }
  0xa8   :  { %v63_v32 = vmul.f32 %v694_v28, %v57_v27 }
  0xa9   :  { %v798_v30 = vpop.eup %797 }
  0xaa   :  { %v58_v31 = vmul.f32 %v798_v30, %v52_v29  ;;  %v69_v35 = vadd.f32 %v695_v33, %v63_v32 }
  0xac   :  { %v64_v34 = vmul.f32 %v694_v28, %v58_v31 }
  0xae   :  { %v70_v36 = vadd.f32 %v695_v33, %v64_v34 }
  0xb0   :  { %v772_v37 = vpack.c.bf16 %v70_v36, %v69_v35 }
  0xb2   :  { %773 = vmatprep.subr.bf16.mxu0 %v772_v37 }
  0xb3   :  { %775 = vmatpush3.bf16.msra.mxu0 %v772_v37 }
  0xb6   :  { %737 = vmatmul.mubr.msk.f32.vlgmr.msra.gmra.mrb[0].mxu0 %vm75_vm1, %v72_v38 }
  0xb7   :  { %739 = vmatprep.mubr.msk.f32.mxu0 %vm75_vm1, %v73_v39 }
  0xba   :  { %740 = vmatmul.mubr.msk.f32.gmra.mrb[2].mxu0 %vm75_vm1, %v74_v40 }
  0xbb   :  { %746 = vmatprep.mubr.msk.f32.mxu0 %vm75_vm1, %v275_v41 }
 0x189   :  { %v738_v45 = vpop.f32.mrb[0].mxu0 }
 0x18a   :  { %v178_v46 = vmul.f32 %v738_v45, %v174_v43  ;;  %v154_v47 = vpop.f32.mrb[1].mxu0 }
 0x18b   :  { %v177_v49 = vmul.f32 %v173_v44, %v154_v47 }
 0x18c   :  { %v954_v55 = vadd.f32 %v182_v48, %v178_v46 }
 0x18d   :  { %v741_v53 = vpop.f32.mrb[2].mxu0  ;;  %v959_v59 = vadd.f32 %v181_v51, %v177_v49 }
 0x18e   :  { %v180_v56 = vmul.f32 %v741_v53, %v176_v50  ;;  %v164_v57 = vpop.f32.mrb[3].mxu0  ;;  %v190_v63 = vmul.f32 %v954_v55, %v954_v55 }
 0x18f   :  { %v179_v60 = vmul.f32 %v175_v52, %v164_v57  ;;  %v189_v3 = vmul.f32 %v959_v59, %v959_v59 }
 0x190   :  { %v961_v61 = vadd.f32 %v184_v54, %v180_v56 }
 0x191   :  { %v963_v62 = vadd.f32 %v183_v58, %v179_v60 }
 0x192   :  { %v192_v2 = vmul.f32 %v961_v61, %v961_v61 }
 0x193   :  { %v191_v4 = vmul.f32 %v963_v62, %v963_v62 }
 0x194   :  { %v194_v5 = vadd.f32 %v192_v2, %v190_v63 }
 0x195   :  { %v193_v6 = vadd.f32 %v191_v4, %v189_v3 }
 0x196   :  { %v196_v7 = vadd.f32 1e-12, %v194_v5 }
 0x197   :  { %v195_v8 = vadd.f32 1e-12, %v193_v6 }
 0x198   :  { %799 = vrsqrt.f32 %v196_v7  ;;  %vm206_vm2 = vcmp.eq.f32.partialorder %v196_v7, inf  ;;  %v209_v12 = vand.u32 2147483648, %v196_v7  ;;  %vm208_vm3 = vcmp.eq.f32.partialorder %v196_v7, 0.0 }
 0x199   :  { %801 = vrsqrt.f32 %v195_v8  ;;  %vm199_vm4 = vcmp.eq.f32.partialorder %v195_v8, inf  ;;  %v202_v17 = vand.u32 2147483648, %v195_v8  ;;  %vm201_vm5 = vcmp.eq.f32.partialorder %v195_v8, 0.0 }
 0x1a2   :  { %v800_v9 = vpop.eup %799 }
 0x1a3   :  { %v802_v10 = vpop.eup %801  ;;  %v205_v11 = vmul.f32 %v800_v9, %v196_v7 }
 0x1a4   :  { %v198_v13 = vmul.f32 %v802_v10, %v195_v8 }
 0x1a5   :  { %v207_v14 = vsel %vm206_vm2, %v196_v7, %v205_v11 }
 0x1a6   :  { %v210_v15 = vsel %vm208_vm3, %v209_v12, %v207_v14  ;;  %v200_v16 = vsel %vm199_vm4, %v195_v8, %v198_v13 }
 0x1a7   :  { %v212_v18 = vand.u32 2147483647, %v210_v15  ;;  %v203_v19 = vsel %vm201_vm5, %v202_v17, %v200_v16  ;;  %v266_v49 = vadd.f32 1e-06, %v210_v15  ;;  %vm254_vm6 = vcmp.ge.f32.partialorder %v210_v15, 0.0 }
 0x1a8   :  { %v211_v21 = vand.u32 2147483647, %v203_v19  ;;  %v265_v54 = vadd.f32 1e-06, %v203_v19  ;;  %v260_v5 = vmul.f32 0.5, %v210_v15  ;;  %vm253_vm7 = vcmp.ge.f32.partialorder %v203_v19, 0.0 }
 0x1a9   :  { %v214_v20 = vmul.f32 0.70710677, %v212_v18  ;;  %v259_v11 = vmul.f32 0.5, %v203_v19  ;;  %v276_v19 = vld [vmem:[%s1047_s1 + $0x38] sm:$0xff] }
 0x1aa   :  { %v213_v23 = vmul.f32 0.70710677, %v211_v21 }
 0x1ab   :  { %v216_v22 = vmul.f32 0.3275911, %v214_v20  ;;  %v242_v27 = vsub.f32 0.0, %v214_v20 }
 0x1ac   :  { %v215_v25 = vmul.f32 0.3275911, %v213_v23  ;;  %v241_v28 = vsub.f32 0.0, %v213_v23 }
 0x1ad   :  { %v218_v24 = vadd.f32 1.0, %v216_v22  ;;  %v244_v30 = vmul.f32 %v242_v27, %v214_v20 }
 0x1ae   :  { %v217_v26 = vadd.f32 1.0, %v215_v25  ;;  %v243_v34 = vmul.f32 %v241_v28, %v213_v23 }
 0x1af   :  { %803 = vrcp.f32 %v218_v24  ;;  %v247_v35 = vmul.f32 1.442695, %v244_v30 }
 0x1b0   :  { %805 = vrcp.f32 %v217_v26  ;;  %v245_v40 = vmul.f32 1.442695, %v243_v34 }
 0x1b1   :  { %807 = vpow2.f32 %v247_v35  ;;  %v791_v35 = vld [vmem:[%s1049_s3] sm:$0xff]  }
 0x1b2   :  { %809 = vpow2.f32 %v245_v40 }
 0x1b3   :  { %811 = vrcp.f32 %v266_v49 }
 0x1b4   :  { %813 = vrcp.f32 %v265_v54 }
 0x1b9   :  { %v804_v29 = vpop.eup %803 }
 0x1ba   :  { %v224_v31 = vmul.f32 1.0614054, %v804_v29  ;;  %v806_v32 = vpop.eup %805 }
 0x1bb   :  { %v223_v36 = vmul.f32 1.0614054, %v806_v32  ;;  %v808_v52 = vpop.eup %807 }
 0x1bc   :  { %v226_v33 = vadd.f32 -1.4531521, %v224_v31  ;;  %v810_v58 = vpop.eup %809 }
 0x1bd   :  { %v225_v38 = vadd.f32 -1.4531521, %v223_v36  ;;  %v812_v10 = vpop.eup %811  ;;  %v851_v36 = vmov 0.0  }
 0x1be   :  { %v228_v37 = vmul.f32 %v804_v29, %v226_v33  ;;  %v814_v16 = vpop.eup %813 }
 0x1bf   :  { %v227_v41 = vmul.f32 %v806_v32, %v225_v38 }
 0x1c0   :  { %v230_v39 = vadd.f32 1.4214138, %v228_v37  ;;  %v792_v37 = vld [vmem:[%s1049_s3 + $0x8] sm:$0xff]  }
 0x1c1   :  { %v229_v43 = vadd.f32 1.4214138, %v227_v41 }
 0x1c2   :  { %v232_v42 = vmul.f32 %v804_v29, %v230_v39 }
 0x1c3   :  { %v231_v45 = vmul.f32 %v806_v32, %v229_v43 }
 0x1c4   :  { %v234_v44 = vadd.f32 -0.28449672, %v232_v42 }
 0x1c5   :  { %v233_v47 = vadd.f32 -0.28449672, %v231_v45 }
 0x1c6   :  { %v236_v46 = vmul.f32 %v804_v29, %v234_v44 }
 0x1c7   :  { %v235_v50 = vmul.f32 %v806_v32, %v233_v47 }
 0x1c8   :  { %v238_v48 = vadd.f32 0.2548296, %v236_v46 }
 0x1c9   :  { %v237_v53 = vadd.f32 0.2548296, %v235_v50 }
 0x1ca   :  { %v240_v51 = vmul.f32 %v804_v29, %v238_v48 }
 0x1cb   :  { %v239_v57 = vmul.f32 %v806_v32, %v237_v53 }
 0x1cc   :  { %v250_v56 = vmul.f32 %v808_v52, %v240_v51 }
 0x1cd   :  { %v249_v63 = vmul.f32 %v810_v58, %v239_v57  ;;  %v704_v58 = vld [vmem:[%s1048_s2 + $0x42] ss:$0 sm:$0xff] }
 0x1ce   :  { %v252_v60 = vsub.f32 1.0, %v250_v56 }
 0x1cf   :  { %v251_v3 = vsub.f32 1.0, %v249_v63 }
 0x1d0   :  { %v256_v2 = vsub.f32 0.0, %v252_v60 }
 0x1d1   :  { %v255_v7 = vsub.f32 0.0, %v251_v3 }
 0x1d2   :  { %v258_v4 = vsel %vm254_vm6, %v252_v60, %v256_v2 }
 0x1d3   :  { %v262_v6 = vadd.f32 1.0, %v258_v4  ;;  %v257_v9 = vsel %vm253_vm7, %v251_v3, %v255_v7  ;;  %v705_v3 = vld [vmem:[%s1048_s2 + $0x43] ss:$0 sm:$0xff] }
 0x1d4   :  { %v261_v12 = vadd.f32 1.0, %v257_v9  ;;  %v793_v9 = vld [vmem:[%s1049_s3 + $0x10] sm:$0xff]  }
 0x1d5   :  { %v264_v8 = vmul.f32 %v262_v6, %v260_v5 }
 0x1d6   :  { %v263_v14 = vmul.f32 %v261_v12, %v259_v11  ;;  %v496_v11 = vlaneseq }
 0x1d7   :  { %v270_v13 = vmul.f32 %v812_v10, %v264_v8  ;;  %v794_v10 = vld [vmem:[%s1049_s3 + $0x18] sm:$0xff]  }
 0x1d8   :  { %v268_v18 = vmul.f32 %v814_v16, %v263_v14  ;;  %v497_v12 = vshrl.u32 %v496_v11, 7 }
 0x1d9   :  { %v278_v17 = vmul.f32 %v270_v13, %v961_v61  ;;  %v274_v20 = vmul.f32 %v270_v13, %v954_v55  ;;  %v272_v61 = vld [vmem:[%s1047_s1 + $0x28] sm:$0xff]  ;;  %v489_v13 = vld [vmem:[%s1049_s3 + $0x20] sm:$0x1] }
 0x1da   :  { %v277_v21 = vmul.f32 %v268_v18, %v963_v62  ;;  %v273_v15 = vmul.f32 %v268_v18, %v959_v59  ;;  %v490_v14 = vunpack.c.l.bf16 %v489_v13  ;;  %v498_v16 = vsub.s32 0, %v497_v12  ;;  %v711_v12 = vld [vmem:[%s1048_s2 + $0x44] ss:$0 sm:$0xff] }
 0x1dc   :  { %v776_v22 = vpack.c.bf16 %v278_v17, %v277_v21  ;;  %v780_v23 = vpack.c.bf16 %v274_v20, %v273_v15  ;;  %v499_v17 = vrot.slane %v490_v14, %v498_v16 }
 0x1de   :  { %777 = vmatprep.subr.bf16.mxu0 %v776_v22  ;;  %781 = vmatprep.subr.bf16.mxu1 %v780_v23 }
 0x1df   :  { %779 = vmatpush3.bf16.msra.mxu0 %v776_v22  ;;  %783 = vmatpush3.bf16.msra.mxu1 %v780_v23 }
 0x1e0   :  { %756 = vmatprep.subr.bf16.mxu0 %v851_v36  ;;  %764 = vmatprep.subr.bf16.mxu1 %v851_v36 }
 0x1e2   :  { %747 = vmatmul.mubr.msk.f32.vlgmr.msra.gmra.mrb[4].mxu0 %vm75_vm1, %v276_v19  ;;  %754 = vmatmul.mubr.msk.f32.vlgmr.msra.gmra.mrb[0].mxu1 %vm75_vm1, %v272_v61 }
 0x1e3   :  { %757 = vmatpush3.bf16.msra.mxu0 %v791_v35  ;;  %760 = vmatprep.mubr.msk.bf16.mxu0 %vm852_vm8, %v851_v36 }
 0x1e4   :  { %758 = vmatprep.subr.bf16.mxu0 %v851_v36  ;;  %768 = vmatprep.mubr.msk.bf16.mxu1 %vm852_vm8, %v851_v36 }
 0x1e7   :  { %759 = vmatpush3.bf16.msra.mxu0 %v792_v37 }
 0x1e8   :  { %765 = vmatpush3.bf16.xpose.msra.mxu1 %v793_v9 }
 0x1e9   :  { %766 = vmatprep.subr.bf16.mxu1 %v851_v36 }
 0x1f0   :  { %767 = vmatpush3.bf16.xpose.msra.mxu1 %v794_v10 }
 0x2b5   :  { %v748_v55 = vpop.f32.mrb[4].mxu0  ;;  %v755_v59 = vpop.f32.mrb[0].mxu1 }
 0x2b6   :  { %v438_v62 = vadd.f32 %v755_v59, %v748_v55  ;;  %v351_v24 = vpop.f32.mrb[5].mxu0  ;;  %v432_v25 = vpop.f32.mrb[1].mxu1 }
 0x2b7   :  { %v433_v26 = vadd.f32 %v432_v25, %v351_v24 }
 0x2b8   :  { %v442_v27 = vadd.f32 %v438_v62, %v889_v1 }
 0x2b9   :  { %v441_v28 = vadd.f32 %v433_v26, %v884_v0 }
 0x2ba   :  { %v988_v29 = vadd.f32 %v442_v27, %v889_v1 }
 0x2bb   :  { %v991_v30 = vadd.f32 %v441_v28, %v884_v0 }
 0x2bc   :  { %v448_v31 = vsel %vm26_vm0, %v988_v29, 0.0  ;;  %v452_v32 = vmul.f32 %v988_v29, %v988_v29 }
 0x2bd   :  { %449 = vadd.xlane.f32.xlu1 %v448_v31  ;;  %v445_v33 = vsel %vm26_vm0, %v991_v30, 0.0  ;;  %v451_v34 = vmul.f32 %v991_v30, %v991_v30 }
 0x2be   :  { %446 = vadd.xlane.f32.xlu0 %v445_v33  ;;  %v456_v1 = vsel %vm26_vm0, %v452_v32, 0.0 }
 0x2bf   :  { %v453_v0 = vsel %vm26_vm0, %v451_v34, 0.0 }
 0x2c1   :  { %457 = vadd.xlane.f32.xlu1 %v456_v1 }
 0x2c2   :  { %454 = vadd.xlane.f32.xlu0 %v453_v0 }
 0x34a   :  { %v450_v38 = vpop.xlane.xlu1 %449 }
 0x34b   :  { %v460_v39 = vmul.f32 0.03125, %v450_v38  ;;  %v447_v40 = vpop.xlane.xlu0 %446 }
 0x34c   :  { %v459_v41 = vmul.f32 0.03125, %v447_v40 }
 0x34d   :  { %v464_v43 = vmul.f32 %v460_v39, %v460_v39  ;;  %v470_v54 = vsub.f32 %v988_v29, %v460_v39 }
 0x34e   :  { %v458_v42 = vpop.xlane.xlu1 %457  ;;  %v463_v46 = vmul.f32 %v459_v41, %v459_v41  ;;  %v469_v57 = vsub.f32 %v991_v30, %v459_v41 }
 0x34f   :  { %v462_v44 = vmul.f32 0.03125, %v458_v42  ;;  %v455_v45 = vpop.xlane.xlu0 %454 }
 0x350   :  { %v461_v47 = vmul.f32 0.03125, %v455_v45 }
 0x351   :  { %v466_v48 = vsub.f32 %v462_v44, %v464_v43 }
 0x352   :  { %v465_v49 = vsub.f32 %v461_v47, %v463_v46 }
 0x353   :  { %v468_v50 = vmax.f32 %v466_v48, 0.0 }
 0x354   :  { %v467_v51 = vmax.f32 %v465_v49, 0.0 }
 0x355   :  { %v472_v52 = vadd.f32 1e-05, %v468_v50 }
 0x356   :  { %v471_v53 = vadd.f32 1e-05, %v467_v51 }
 0x357   :  { %815 = vrsqrt.f32 %v472_v52 }
 0x358   :  { %817 = vrsqrt.f32 %v471_v53 }
 0x361   :  { %v816_v56 = vpop.eup %815 }
 0x362   :  { %v818_v60 = vpop.eup %817  ;;  %v476_v63 = vmul.f32 %v816_v56, %v470_v54 }
 0x363   :  { %v475_v2 = vmul.f32 %v818_v60, %v469_v57 }
 0x364   :  { %v482_v4 = vmul.f32 %v704_v58, %v476_v63 }
 0x365   :  { %v481_v5 = vmul.f32 %v704_v58, %v475_v2 }
 0x366   :  { %v488_v6 = vadd.f32 %v705_v3, %v482_v4 }
 0x367   :  { %v487_v7 = vadd.f32 %v705_v3, %v481_v5 }
 0x369   :  { %v491_v8 = vpack.c.bf16 %v488_v6, %v487_v7 }
 0x36b   :  { %761 = vmatmul.mubr.msk.bf16.vlgmr.msra.gmra.mrb[8].mxu0 %vm26_vm0, %v491_v8 }
 0x43e   :  { %v549_v18 = vpop.f32.mrb[8].mxu0 }
 0x43f   :  { %v550_v20 = vadd.f32 %v549_v18, %v499_v17  ;;  %v762_v21 = vpop.f32.mrb[9].mxu0 }
 0x440   :  { %v552_v15 = vpop.f32.mrb[10].mxu0 }
 0x441   :  { %v556_v22 = vand.u32 2147483647, %v550_v20  ;;  %v553_v23 = vadd.f32 %v552_v15, %v499_v17  ;;  %v763_v19 = vpop.f32.mrb[11].mxu0  ;;  %vm598_vm9 = vcmp.ge.f32.partialorder %v550_v20, 0.0  ;;  %v604_v6 = vmul.f32 0.5, %v550_v20 }
 0x443   :  { %v558_v61 = vmul.f32 0.70710677, %v556_v22  ;;  %v557_v55 = vand.u32 2147483647, %v553_v23  ;;  %vm599_vm10 = vcmp.ge.f32.partialorder %v553_v23, 0.0  ;;  %v605_v7 = vmul.f32 0.5, %v553_v23 }
 0x445   :  { %v560_v59 = vmul.f32 0.3275911, %v558_v61  ;;  %v559_v62 = vmul.f32 0.70710677, %v557_v55  ;;  %v586_v27 = vsub.f32 0.0, %v558_v61 }
 0x447   :  { %v562_v24 = vadd.f32 1.0, %v560_v59  ;;  %v561_v25 = vmul.f32 0.3275911, %v559_v62  ;;  %v587_v28 = vsub.f32 0.0, %v559_v62  ;;  %v588_v32 = vmul.f32 %v586_v27, %v558_v61 }
 0x449   :  { %819 = vrcp.f32 %v562_v24  ;;  %v563_v26 = vadd.f32 1.0, %v561_v25  ;;  %v589_v0 = vmul.f32 %v587_v28, %v559_v62  ;;  %v590_v35 = vmul.f32 1.442695, %v588_v32 }
 0x44b   :  { %821 = vrcp.f32 %v563_v26  ;;  %v592_v40 = vmul.f32 1.442695, %v589_v0 }
 0x44c   :  { %823 = vpow2.f32 %v590_v35 }
 0x44d   :  { %825 = vpow2.f32 %v592_v40 }
 0x453   :  { %v820_v31 = vpop.eup %819 }
 0x454   :  { %v568_v33 = vmul.f32 1.0614054, %v820_v31 }
 0x455   :  { %v822_v34 = vpop.eup %821 }
 0x456   :  { %v570_v1 = vadd.f32 -1.4531521, %v568_v33  ;;  %v569_v36 = vmul.f32 1.0614054, %v822_v34  ;;  %v824_v51 = vpop.eup %823 }
 0x457   :  { %v826_v56 = vpop.eup %825 }
 0x458   :  { %v572_v37 = vmul.f32 %v820_v31, %v570_v1  ;;  %v571_v38 = vadd.f32 -1.4531521, %v569_v36 }
 0x45a   :  { %v574_v39 = vadd.f32 1.4214138, %v572_v37  ;;  %v573_v41 = vmul.f32 %v822_v34, %v571_v38 }
 0x45c   :  { %v576_v42 = vmul.f32 %v820_v31, %v574_v39  ;;  %v575_v43 = vadd.f32 1.4214138, %v573_v41 }
 0x45e   :  { %v578_v44 = vadd.f32 -0.28449672, %v576_v42  ;;  %v577_v45 = vmul.f32 %v822_v34, %v575_v43 }
 0x460   :  { %v580_v46 = vmul.f32 %v820_v31, %v578_v44  ;;  %v579_v47 = vadd.f32 -0.28449672, %v577_v45 }
 0x462   :  { %v582_v48 = vadd.f32 0.2548296, %v580_v46  ;;  %v581_v49 = vmul.f32 %v822_v34, %v579_v47 }
 0x464   :  { %v584_v50 = vmul.f32 %v820_v31, %v582_v48  ;;  %v583_v52 = vadd.f32 0.2548296, %v581_v49 }
 0x466   :  { %v594_v53 = vmul.f32 %v824_v51, %v584_v50  ;;  %v585_v54 = vmul.f32 %v822_v34, %v583_v52 }
 0x468   :  { %v596_v57 = vsub.f32 1.0, %v594_v53  ;;  %v595_v58 = vmul.f32 %v826_v56, %v585_v54 }
 0x46a   :  { %v600_v60 = vsub.f32 0.0, %v596_v57  ;;  %v597_v63 = vsub.f32 1.0, %v595_v58 }
 0x46c   :  { %v602_v2 = vsel %vm598_vm9, %v596_v57, %v600_v60  ;;  %v601_v3 = vsub.f32 0.0, %v597_v63 }
 0x46d   :  { %v606_v4 = vadd.f32 1.0, %v602_v2 }
 0x46e   :  { %v603_v5 = vsel %vm599_vm10, %v597_v63, %v601_v3 }
 0x46f   :  { %v607_v8 = vadd.f32 1.0, %v603_v5  ;;  %v608_v9 = vmul.f32 %v606_v4, %v604_v6 }
 0x471   :  { %v609_v10 = vmul.f32 %v607_v8, %v605_v7 }
 0x473   :  { %v610_v11 = vpack.c.bf16 %v609_v10, %v608_v9 }
 0x475   :  { %769 = vmatmul.mubr.bf16.vlgmr.msra.gmra.mrb[4].mxu1 %v610_v11 }
 0x548   :  { %v661_v13 = vpop.f32.mrb[4].mxu1 }
 0x549   :  { %v668_v14 = vadd.f32 %v661_v13, %v991_v30  ;;  %v770_v16 = vpop.f32.mrb[5].mxu1 }
 0x54a   :  { %v664_v17 = vpop.f32.mrb[6].mxu1 }
 0x54b   :  { %v674_v18 = vadd.f32 %v711_v12, %v668_v14  ;;  %v669_v20 = vadd.f32 %v664_v17, %v988_v29  ;;  %v771_v21 = vpop.f32.mrb[7].mxu1 }
 0x54d   :  { %676 = vst.msk [vmem:[#allocation2] sm:$0xff] %vm26_vm0, %v674_v18  ;;  %v675_v15 = vadd.f32 %v711_v12, %v669_v20 }
 0x54f   :  { %677 = vst.msk [vmem:[#allocation2 + $0x8] sm:$0xff] %vm26_vm0, %v675_v15 }
 0x550   :  { %838 = shalt.err (!%p835_p4)
}
 0x551   :  { %s839_s0 = scalar_lea.hbm %s1050_s4, 256 }
 0x552   :  { %p840_p5 = scmp.ne.s32.totalorder %s1050_s4, %s839_s0  ;;  %p843_p6 = scmp.lt.u32.totalorder %s839_s0, %s1050_s4 }
 0x554   :  { %p845_p7 = pnand %p843_p6, %p840_p5 }
 0x556   :  { %848 = shalt.err (!%p845_p7)
}
 0x557   :  { %s854_s23 = smov 128   ;;  %s855_s24 = smov 8  }
 0x558   :  { %689 = dma.vmem_to_hbm [thread:$0]  %s684_s16, 256, %s1050_s4, [#allocation3], %s854_s23, %s854_s23, %s855_s24  }
 0x559   :  { %849 = dma.done.wait [#allocation3], 256  }
 0x55a   :  { %850 = vsyncadd [#allocation3], 4294967040 }
 0x55b   :  { %693 = vsyncpa [#allocation3], 1 }

</bundles_post_ra>
